<compile_context>
chip_gen: v6e
topology: v6e:2x2x1
jax: 0.10.0
libtpu: 0.0.40
codegen_flags: <defaults>
</compile_context>

<pallas_src>
import functools

import jax
import jax.numpy as jnp
from jax import lax
from jax.experimental import pallas as pl
from jax.experimental.pallas import tpu as pltpu

_BN_EPS = 1e-5
_LANES = 128
_DEFAULT_TILE_M = 512
_VMEM_LIMIT_BYTES = 32 * 1024 * 1024   # safe on v5e/v6e/v7x


def _round_up(x, m):
    return (x + m - 1) // m * m


# ----------------------------------------------------------------------------
# Pass 1: tiled GEMM (bf16 x bf16 -> f32) + per-tile partial BN statistics.
# ----------------------------------------------------------------------------
def _gemm_stats_kernel(p_ref, w_ref, o_ref, stat_ref):
    # p_ref: [TILE_M, Kc_pad] bf16, w_ref: [Kc_pad, Np] bf16
    y = jnp.dot(p_ref[...], w_ref[...], preferred_element_type=jnp.float32)
    o_ref[...] = y                                            # f32, 128-lane dense
    n = y.shape[1]
    s0 = jnp.sum(y, axis=0, keepdims=True)                    # [1, Np] channel sum
    s1 = jnp.sum(y * y, axis=0, keepdims=True)                # [1, Np] channel sumsq
    pad = jnp.zeros((6, n), jnp.float32)                      # sublane-align to 8
    stat_ref[...] = jnp.concatenate([s0, s1, pad], axis=0)[None]


def _conv_gemm(patches, w_mat, tile_m):
    m_pad, kc_pad = patches.shape
    np_ = w_mat.shape[1]
    num_tiles = m_pad // tile_m

    grid_spec = pltpu.PrefetchScalarGridSpec(
        num_scalar_prefetch=0,
        grid=(num_tiles,),
        in_specs=[
            pl.BlockSpec((tile_m, kc_pad), lambda i: (i, 0)),
            pl.BlockSpec((kc_pad, np_), lambda i: (0, 0)),     # weights stay resident
        ],
        out_specs=(
            pl.BlockSpec((tile_m, np_), lambda i: (i, 0)),
            pl.BlockSpec((1, 8, np_), lambda i: (i, 0, 0)),
        ),
    )
    flops = 2 * m_pad * kc_pad * np_
    bytes_accessed = (m_pad * kc_pad * 2 + kc_pad * np_ * 2 +
                      m_pad * np_ * 4 + num_tiles * 8 * np_ * 4)
    return pl.pallas_call(
        _gemm_stats_kernel,
        grid_spec=grid_spec,
        out_shape=(
            jax.ShapeDtypeStruct((m_pad, np_), jnp.float32),
            jax.ShapeDtypeStruct((num_tiles, 8, np_), jnp.float32),
        ),
        compiler_params=pltpu.CompilerParams(
            dimension_semantics=("parallel",),
            vmem_limit_bytes=_VMEM_LIMIT_BYTES,
        ),
        cost_estimate=pl.CostEstimate(
            flops=flops, transcendentals=0, bytes_accessed=bytes_accessed),
    )(patches, w_mat)


# ----------------------------------------------------------------------------
# Pass 2: tiled affine (normalize or bias) + ReLU epilogue, f32 math.
# ----------------------------------------------------------------------------
def _make_affine_kernel(do_relu):
    def kernel(y_ref, sc_ref, sh_ref, o_ref):
        y = y_ref[...] * sc_ref[...] + sh_ref[...]
        if do_relu:
            y = jnp.maximum(y, 0.0)
        o_ref[...] = y.astype(o_ref.dtype)
    return kernel


def _affine_relu(y, scale, shift, do_relu, tile_m):
    m_pad, np_ = y.shape
    num_tiles = m_pad // tile_m
    grid_spec = pltpu.PrefetchScalarGridSpec(
        num_scalar_prefetch=0,
        grid=(num_tiles,),
        in_specs=[
            pl.BlockSpec((tile_m, np_), lambda i: (i, 0)),
            pl.BlockSpec((1, np_), lambda i: (0, 0)),
            pl.BlockSpec((1, np_), lambda i: (0, 0)),
        ],
        out_specs=pl.BlockSpec((tile_m, np_), lambda i: (i, 0)),
    )
    return pl.pallas_call(
        _make_affine_kernel(do_relu),
        grid_spec=grid_spec,
        out_shape=jax.ShapeDtypeStruct((m_pad, np_), jnp.float32),
        compiler_params=pltpu.CompilerParams(
            dimension_semantics=("parallel",),
            vmem_limit_bytes=_VMEM_LIMIT_BYTES,
        ),
    )(y, scale, shift)


# ----------------------------------------------------------------------------
# Conv3d module forward (PyTorch NCDHW layout, weight (Cout,Cin,Kd,Kh,Kw)).
# ----------------------------------------------------------------------------
def conv3d_bn_relu(x_ncdhw, weight, bias=None, *, stride=1, padding=0,
                   bn=True, relu=True):
    if isinstance(stride, int):
        stride = (stride,) * 3
    if isinstance(padding, int):
        padding = (padding,) * 3
    B, Cin, D, H, W = x_ncdhw.shape
    Cout, _, Kd, Kh, Kw = weight.shape
    sd, sh, sw = stride
    pd, ph, pw = padding
    Do = (D + 2 * pd - Kd) // sd + 1
    Ho = (H + 2 * ph - Kh) // sh + 1
    Wo = (W + 2 * pw - Kw) // sw + 1

    # NCDHW -> NDHWC, bf16 feed for the MXU (f32 accumulate inside the kernel).
    x = jnp.transpose(x_ncdhw, (0, 2, 3, 4, 1)).astype(jnp.bfloat16)
    xpad = jnp.pad(x, ((0, 0), (pd, pd), (ph, ph), (pw, pw), (0, 0)))

    # TODO(synk): im2col still materialized in HBM (fallback path) — see header.
    cols = []
    for kd in range(Kd):
        for kh in range(Kh):
            for kw in range(Kw):
                cols.append(xpad[:, kd:kd + sd * Do:sd,
                                 kh:kh + sh * Ho:sh,
                                 kw:kw + sw * Wo:sw, :])
    M = B * Do * Ho * Wo
    Kc = Kd * Kh * Kw * Cin
    patches = jnp.concatenate(cols, axis=-1).reshape(M, Kc)

    Np = _round_up(Cout, _LANES)              # lane-dense GEMM N dimension
    Kc_pad = _round_up(Kc, _LANES)
    tile_m = min(_DEFAULT_TILE_M, _round_up(M, 8))
    M_pad = _round_up(M, tile_m)

    patches = jnp.pad(patches, ((0, M_pad - M), (0, Kc_pad - Kc)))
    w_mat = jnp.transpose(weight, (2, 3, 4, 1, 0)).reshape(Kc, Cout)
    w_mat = jnp.pad(w_mat, ((0, Kc_pad - Kc), (0, Np - Cout))).astype(jnp.bfloat16)

    # Pass 1: conv GEMM + per-tile partial channel statistics.
    y, stats = _conv_gemm(patches, w_mat, tile_m)

    # Tiny cross-tile reduction + epilogue parameters in plain JAX.
    if bn:
        inv_m = 1.0 / float(M)                # padded rows are exact zeros
        ssum = jnp.sum(stats[:, 0, :], axis=0)
        ssq = jnp.sum(stats[:, 1, :], axis=0)
        mean = ssum * inv_m
        var = jnp.maximum(ssq * inv_m - mean * mean, 0.0)
        scale = lax.rsqrt(var + _BN_EPS)      # gamma = 1
        shift = -mean * scale                 # beta = 0
    else:
        scale = jnp.ones((Np,), jnp.float32)
        shift = jnp.zeros((Np,), jnp.float32)
        if bias is not None:
            shift = shift.at[:Cout].set(bias.astype(jnp.float32))

    # Pass 2: fused normalize / bias + ReLU.
    if bn or relu or (bias is not None):
        y = _affine_relu(y, scale.reshape(1, Np), shift.reshape(1, Np),
                         relu, tile_m)

    out = y[:M, :Cout].reshape(B, Do, Ho, Wo, Cout)
    return jnp.transpose(out, (0, 4, 1, 2, 3))   # back to NCDHW


# ----------------------------------------------------------------------------
# Deterministic init + pure-JAX (f32) reference for validation.
# ----------------------------------------------------------------------------
def _xavier_uniform_3d(key, cout, cin, k):
    fan_in = cin * k * k * k
    fan_out = cout * k * k * k
    bound = (6.0 / (fan_in + fan_out)) ** 0.5
    return jax.random.uniform(key, (cout, cin, k, k, k), jnp.float32,
                              -bound, bound)


def _reference_conv3d(x, w, bias, stride, padding, bn, relu):
    s = (stride,) * 3 if isinstance(stride, int) else stride
    p = (padding,) * 3 if isinstance(padding, int) else padding
    dn = lax.conv_dimension_numbers(x.shape, w.shape, ('NCDHW', 'OIDHW', 'NCDHW'))
    y = lax.conv_general_dilated(x, w, window_strides=s,
                                 padding=[(pi, pi) for pi in p],
                                 dimension_numbers=dn)
    if bias is not None:
        y = y + bias.reshape(1, -1, 1, 1, 1)
    if bn:
        mean = jnp.mean(y, axis=(0, 2, 3, 4), keepdims=True)
        var = jnp.mean((y - mean) ** 2, axis=(0, 2, 3, 4), keepdims=True)
        y = (y - mean) * lax.rsqrt(var + _BN_EPS)
    if relu:
        y = jnp.maximum(y, 0.0)
    return y


if __name__ == "__main__":
    key = jax.random.PRNGKey(0)
    k_w1, k_w2, k_b2, k_x = jax.random.split(key, 4)

    B, Cin, D, H, W = 2, 4, 8, 16, 16
    Cout, K = 8, 3

    x = jax.random.normal(k_x, (B, Cin, D, H, W), jnp.float32)
    w1 = _xavier_uniform_3d(k_w1, Cout, Cin, K)
    w2 = _xavier_uniform_3d(k_w2, Cout, Cin, K)
    fan_in = Cin * K ** 3
    b2 = jax.random.uniform(k_b2, (Cout,), jnp.float32,
                            -1.0 / (fan_in ** 0.5), 1.0 / (fan_in ** 0.5))

    # Config 1: Conv3d(k=3, stride=1, padding=1, bn=True -> no bias, relu=True)
    conv_s1 = jax.jit(functools.partial(conv3d_bn_relu, stride=1, padding=1,
                                        bn=True, relu=True))
    out1 = jax.block_until_ready(conv_s1(x, w1))
    ref1 = _reference_conv3d(x, w1, None, 1, 1, True, True)

    # Config 2: Conv3d(k=3, stride=2, padding=1, bn=False -> bias, relu=True)
    conv_s2 = jax.jit(functools.partial(conv3d_bn_relu, stride=2, padding=1,
                                        bn=False, relu=True))
    out2 = jax.block_until_ready(conv_s2(x, w2, b2))
    ref2 = _reference_conv3d(x, w2, b2, 2, 1, False, True)

    assert out1.shape == (B, Cout, D, H, W)
    assert out2.shape == (B, Cout, D // 2, H // 2, W // 2)
    assert out1.dtype == jnp.float32 and out2.dtype == jnp.float32
    assert bool(jnp.isfinite(out1).all()) and bool(jnp.isfinite(out2).all())
    # bf16 MXU inputs -> validate against the f32 reference with tolerance.
    assert bool(jnp.allclose(out1, ref1, atol=8e-2, rtol=5e-2))
    assert bool(jnp.allclose(out2, ref2, atol=8e-2, rtol=5e-2))

    print("KERNEL_OK")
</pallas_src>

<mosaic_0001>
module attributes {stable_mosaic.version = 11 : i64} {
  func.func @_gemm_stats_kernel(%arg0: i32, %arg1: memref<512x128xbf16, #tpu.memory_space<vmem>>, %arg2: memref<128x128xbf16, #tpu.memory_space<vmem>>, %arg3: memref<512x128xf32, #tpu.memory_space<vmem>>, %arg4: memref<1x8x128xf32, #tpu.memory_space<vmem>>) attributes {dimension_semantics = [#tpu.dimension_semantics<parallel>], iteration_bounds = array<i64: 8>, scalar_prefetch = 0 : i64, scratch_operands = 0 : i64, tpu.core_type = #tpu.core_type<tc>, window_params = [{transform_indices = @transform_0, window_bounds = array<i64: 512, 128>}, {pipeline_mode = #tpu.pipeline_mode<synchronous>, transform_indices = @transform_1, window_bounds = array<i64: 128, 128>}, {transform_indices = @transform_2, window_bounds = array<i64: 512, 128>}, {transform_indices = @transform_3, window_bounds = array<i64: 1, 8, 128>}]} {
    %c0 = arith.constant 0 : index
    %c0_0 = arith.constant 0 : index
    %0 = vector.load %arg1[%c0, %c0_0] : memref<512x128xbf16, #tpu.memory_space<vmem>>, vector<512x128xbf16>
    %c0_1 = arith.constant 0 : index
    %c0_2 = arith.constant 0 : index
    %1 = vector.load %arg2[%c0_1, %c0_2] : memref<128x128xbf16, #tpu.memory_space<vmem>>, vector<128x128xbf16>
    %cst = arith.constant dense<0.000000e+00> : vector<512x128xf32>
    %2 = tpu.matmul %0, %1, %cst {dimension_numbers = #tpu.dot_dimension_numbers<[1], [0], [0], [1], [0, 0, 1, 1], [], []>} : vector<512x128xbf16>, vector<128x128xbf16>, vector<512x128xf32> -> vector<512x128xf32>
    %c0_3 = arith.constant 0 : index
    %c0_4 = arith.constant 0 : index
    %3 = vector.load %arg3[%c0_3, %c0_4] : memref<512x128xf32, #tpu.memory_space<vmem>>, vector<512x128xf32>
    tpu.vector_store %arg3[%c0_3, %c0_4], %2 {strides = array<i32>} : memref<512x128xf32, #tpu.memory_space<vmem>>, vector<512x128xf32>,
    %cst_5 = arith.constant dense<0.000000e+00> : vector<128xf32>
    %4 = vector.multi_reduction <add>, %2, %cst_5 [0] : vector<512x128xf32> to vector<128xf32>
    %5 = vector.shape_cast %4 : vector<128xf32> to vector<1x128xf32>
    %6 = arith.mulf %2, %2 : vector<512x128xf32>
    %cst_6 = arith.constant dense<0.000000e+00> : vector<128xf32>
    %7 = vector.multi_reduction <add>, %6, %cst_6 [0] : vector<512x128xf32> to vector<128xf32>
    %8 = vector.shape_cast %7 : vector<128xf32> to vector<1x128xf32>
    %cst_7 = arith.constant 0.000000e+00 : f32
    %9 = vector.broadcast %cst_7 : f32 to vector<6x128xf32>
    %10 = tpu.concatenate %5, %8, %9 in 0 : vector<1x128xf32>, vector<1x128xf32>, vector<6x128xf32> -> vector<8x128xf32>
    %11 = vector.shape_cast %10 : vector<8x128xf32> to vector<1x8x128xf32>
    %c0_8 = arith.constant 0 : index
    %c0_9 = arith.constant 0 : index
    %c0_10 = arith.constant 0 : index
    %12 = vector.load %arg4[%c0_8, %c0_9, %c0_10] : memref<1x8x128xf32, #tpu.memory_space<vmem>>, vector<1x8x128xf32>
    tpu.vector_store %arg4[%c0_8, %c0_9, %c0_10], %11 {strides = array<i32>} : memref<1x8x128xf32, #tpu.memory_space<vmem>>, vector<1x8x128xf32>,
    return
  }
  func.func @transform_0(%arg0: i32) -> (i32, i32) {
    %c0_i32 = arith.constant 0 : i32
    %c0_i32_0 = arith.constant 0 : i32
    return %arg0, %c0_i32 : i32, i32
  }
  func.func @transform_1(%arg0: i32) -> (i32, i32) {
    %c0_i32 = arith.constant 0 : i32
    %c0_i32_0 = arith.constant 0 : i32
    %c0_i32_1 = arith.constant 0 : i32
    return %c0_i32, %c0_i32_0 : i32, i32
  }
  func.func @transform_2(%arg0: i32) -> (i32, i32) {
    %c0_i32 = arith.constant 0 : i32
    %c0_i32_0 = arith.constant 0 : i32
    return %arg0, %c0_i32 : i32, i32
  }
  func.func @transform_3(%arg0: i32) -> (i32, i32, i32) {
    %c0_i32 = arith.constant 0 : i32
    %c0_i32_0 = arith.constant 0 : i32
    %c0_i32_1 = arith.constant 0 : i32
    return %arg0, %c0_i32, %c0_i32_0 : i32, i32, i32
  }
}

module attributes {stable_mosaic.version = 11 : i64} {
  func.func @kernel(%arg0: i32, %arg1: memref<512x128xf32, #tpu.memory_space<vmem>>, %arg2: memref<1x128xf32, #tpu.memory_space<vmem>>, %arg3: memref<1x128xf32, #tpu.memory_space<vmem>>, %arg4: memref<512x128xf32, #tpu.memory_space<vmem>>) attributes {dimension_semantics = [#tpu.dimension_semantics<parallel>], iteration_bounds = array<i64: 8>, scalar_prefetch = 0 : i64, scratch_operands = 0 : i64, tpu.core_type = #tpu.core_type<tc>, window_params = [{transform_indices = @transform_0, window_bounds = array<i64: 512, 128>}, {pipeline_mode = #tpu.pipeline_mode<synchronous>, transform_indices = @transform_1, window_bounds = array<i64: 1, 128>}, {pipeline_mode = #tpu.pipeline_mode<synchronous>, transform_indices = @transform_2, window_bounds = array<i64: 1, 128>}, {transform_indices = @transform_3, window_bounds = array<i64: 512, 128>}]} {
    %c0 = arith.constant 0 : index
    %c0_0 = arith.constant 0 : index
    %0 = vector.load %arg1[%c0, %c0_0] : memref<512x128xf32, #tpu.memory_space<vmem>>, vector<512x128xf32>
    %c0_1 = arith.constant 0 : index
    %c0_2 = arith.constant 0 : index
    %1 = vector.load %arg2[%c0_1, %c0_2] : memref<1x128xf32, #tpu.memory_space<vmem>>, vector<1x128xf32>
    %2 = vector.broadcast %1 : vector<1x128xf32> to vector<512x128xf32>
    %3 = arith.mulf %0, %2 : vector<512x128xf32>
    %c0_3 = arith.constant 0 : index
    %c0_4 = arith.constant 0 : index
    %4 = vector.load %arg3[%c0_3, %c0_4] : memref<1x128xf32, #tpu.memory_space<vmem>>, vector<1x128xf32>
    %5 = vector.broadcast %4 : vector<1x128xf32> to vector<512x128xf32>
    %6 = arith.addf %3, %5 : vector<512x128xf32>
    %cst = arith.constant 0.000000e+00 : f32
    %7 = vector.broadcast %cst : f32 to vector<512x128xf32>
    %8 = arith.maximumf %6, %7 : vector<512x128xf32>
    %c0_5 = arith.constant 0 : index
    %c0_6 = arith.constant 0 : index
    %9 = vector.load %arg4[%c0_5, %c0_6] : memref<512x128xf32, #tpu.memory_space<vmem>>, vector<512x128xf32>
    tpu.vector_store %arg4[%c0_5, %c0_6], %8 {strides = array<i32>} : memref<512x128xf32, #tpu.memory_space<vmem>>, vector<512x128xf32>,
    return
  }
  func.func @transform_0(%arg0: i32) -> (i32, i32) {
    %c0_i32 = arith.constant 0 : i32
    %c0_i32_0 = arith.constant 0 : i32
    return %arg0, %c0_i32 : i32, i32
  }
  func.func @transform_1(%arg0: i32) -> (i32, i32) {
    %c0_i32 = arith.constant 0 : i32
    %c0_i32_0 = arith.constant 0 : i32
    %c0_i32_1 = arith.constant 0 : i32
    return %c0_i32, %c0_i32_0 : i32, i32
  }
  func.func @transform_2(%arg0: i32) -> (i32, i32) {
    %c0_i32 = arith.constant 0 : i32
    %c0_i32_0 = arith.constant 0 : i32
    %c0_i32_1 = arith.constant 0 : i32
    return %c0_i32, %c0_i32_0 : i32, i32
  }
  func.func @transform_3(%arg0: i32) -> (i32, i32) {
    %c0_i32 = arith.constant 0 : i32
    %c0_i32_0 = arith.constant 0 : i32
    return %arg0, %c0_i32 : i32, i32
  }
}

</mosaic_0001>

<bundles_post_ra>
// kernel: conv3d_bn_relu.3
= control target key start
LH: loop header
LB: loop body
LE: loop exit
PB: predicated region body
PF: predicated region fallthrough
CT: control target
= control target key end

     0   :  { %s613_s12 = smov 0   ;;  %s900_s0 = inlined_call_operand.vmem [shape: f32[4096,128], index: 0, kind: input, shape index: {}]   ;;  %s901_s1 = inlined_call_operand.vmem [shape: f32[1,128], index: 1, kind: input, shape index: {}]   ;;  %s902_s2 = inlined_call_operand.vmem [shape: f32[1,128], index: 2, kind: input, shape index: {}]   ;;  %s903_s3 = inlined_call_operand.vmem [shape: f32[4096,128], index: 3, kind: output, shape index: {}]  }
   0x1 LB: > { %s564_s13 = sadd.s32 4294967295, %s591_s12   ;;  %p568_p0 = scmp.ge.s32.totalorder %s591_s12, 1  ;;  %s591_s12 = sphi %s613_s12, %s13_s12  }
   0x2   : > { %p138_p1 = scmp.lt.s32.totalorder %s591_s12, 9 }
   0x4   : > { %p139_p2 = pnand %p568_p0, %p138_p1 }
   0x5   : > { %s569_s14 = sshll.u32 (!%p139_p2), %s564_s13, 6 }
   0x6   : > { %142 = sbr.rel (%p139_p2) target bundleno = 68 (0x44), region = 32  ;;  %p163_p3 = scmp.lt.s32.totalorder (!%p139_p2), %s569_s14, 511 }
   0xb   : > { %s905_s14 = smov (!%p163_p3, %s569_s14), 511  ;;  %v624_v0 = vld [vmem:[%s901_s1] ss:$0 sm:$0xff] }
   0xc   : > { %s570_s15 = sshll.u32 %s905_s14, 3  ;;  %v634_v1 = vld [vmem:[%s902_s2] ss:$0 sm:$0xff] }
   0xd   : > { %s629_s20 = scalar_lea.vmem %s900_s0, %s570_s15  ;;  %s657_s25 = scalar_lea.vmem %s903_s3, %s570_s15 }
   0xe   : > { %v174_v2 = vld [vmem:[%s629_s20] sm:$0xff]  ;;  %v175_v3 = vld [vmem:[%s629_s20 + $0x8] sm:$0xff]  ;;  %v176_v4 = vld [vmem:[%s629_s20 + $0x10] sm:$0xff] }
   0xf   : > { %v245_v5 = vmul.f32 %v624_v0, %v174_v2  ;;  %v246_v6 = vmul.f32 %v624_v0, %v175_v3  ;;  %v247_v7 = vmul.f32 %v624_v0, %v176_v4  ;;  %v177_v8 = vld [vmem:[%s629_s20 + $0x18] sm:$0xff]  ;;  %v178_v9 = vld [vmem:[%s629_s20 + $0x20] sm:$0xff]  ;;  %v179_v10 = vld [vmem:[%s629_s20 + $0x28] sm:$0xff] }
  0x10   : > { %v248_v11 = vmul.f32 %v624_v0, %v177_v8  ;;  %v249_v12 = vmul.f32 %v624_v0, %v178_v9  ;;  %v250_v13 = vmul.f32 %v624_v0, %v179_v10  ;;  %v180_v14 = vld [vmem:[%s629_s20 + $0x30] sm:$0xff]  ;;  %v181_v15 = vld [vmem:[%s629_s20 + $0x38] sm:$0xff]  ;;  %v182_v24 = vld [vmem:[%s629_s20 + $0x40] sm:$0xff] }
  0x11   : > { %v316_v16 = vadd.f32 %v634_v1, %v245_v5  ;;  %v317_v17 = vadd.f32 %v634_v1, %v246_v6  ;;  %v318_v18 = vadd.f32 %v634_v1, %v247_v7  ;;  %v251_v19 = vmul.f32 %v624_v0, %v180_v14  ;;  %v183_v25 = vld [vmem:[%s629_s20 + $0x48] sm:$0xff]  ;;  %v184_v26 = vld [vmem:[%s629_s20 + $0x50] sm:$0xff]  ;;  %v185_v31 = vld [vmem:[%s629_s20 + $0x58] sm:$0xff] }
  0x12   : > { %v319_v20 = vadd.f32 %v634_v1, %v248_v11  ;;  %v320_v21 = vadd.f32 %v634_v1, %v249_v12  ;;  %v321_v22 = vadd.f32 %v634_v1, %v250_v13  ;;  %v252_v23 = vmul.f32 %v624_v0, %v181_v15  ;;  %v186_v32 = vld [vmem:[%s629_s20 + $0x60] sm:$0xff]  ;;  %v187_v33 = vld [vmem:[%s629_s20 + $0x68] sm:$0xff]  ;;  %v188_v38 = vld [vmem:[%s629_s20 + $0x70] sm:$0xff] }
  0x13   : > { %v380_v27 = vmax.f32 %v316_v16, 0.0  ;;  %v381_v28 = vmax.f32 %v317_v17, 0.0  ;;  %v382_v29 = vmax.f32 %v318_v18, 0.0  ;;  %v322_v30 = vadd.f32 %v634_v1, %v251_v19  ;;  %v189_v43 = vld [vmem:[%s629_s20 + $0x78] sm:$0xff]  ;;  %v190_v56 = vld [vmem:[%s629_s20 + $0x80] sm:$0xff]  ;;  %v191_v57 = vld [vmem:[%s629_s20 + $0x88] sm:$0xff] }
  0x14   : > { %v383_v34 = vmax.f32 %v319_v20, 0.0  ;;  %v384_v35 = vmax.f32 %v320_v21, 0.0  ;;  %v385_v36 = vmax.f32 %v321_v22, 0.0  ;;  %v323_v37 = vadd.f32 %v634_v1, %v252_v23  ;;  %v192_v58 = vld [vmem:[%s629_s20 + $0x90] sm:$0xff]  ;;  %v193_v63 = vld [vmem:[%s629_s20 + $0x98] sm:$0xff]  ;;  %v194_v2 = vld [vmem:[%s629_s20 + $0xa0] sm:$0xff] }
  0x15   : > { %444 = vst [vmem:[%s657_s25] sm:$0xff] %v380_v27  ;;  %445 = vst [vmem:[%s657_s25 + $0x8] sm:$0xff] %v381_v28  ;;  %v386_v39 = vmax.f32 %v322_v30, 0.0  ;;  %v253_v40 = vmul.f32 %v624_v0, %v182_v24  ;;  %v254_v41 = vmul.f32 %v624_v0, %v183_v25  ;;  %v255_v42 = vmul.f32 %v624_v0, %v184_v26  ;;  %v195_v3 = vld [vmem:[%s629_s20 + $0xa8] sm:$0xff]  ;;  %v196_v8 = vld [vmem:[%s629_s20 + $0xb0] sm:$0xff] }
  0x16   : > { %446 = vst [vmem:[%s657_s25 + $0x10] sm:$0xff] %v382_v29  ;;  %447 = vst [vmem:[%s657_s25 + $0x18] sm:$0xff] %v383_v34  ;;  %v387_v44 = vmax.f32 %v323_v37, 0.0  ;;  %v256_v45 = vmul.f32 %v624_v0, %v185_v31  ;;  %v257_v46 = vmul.f32 %v624_v0, %v186_v32  ;;  %v258_v47 = vmul.f32 %v624_v0, %v187_v33  ;;  %v197_v13 = vld [vmem:[%s629_s20 + $0xb8] sm:$0xff]  ;;  %v198_v26 = vld [vmem:[%s629_s20 + $0xc0] sm:$0xff] }
  0x17   : > { %448 = vst [vmem:[%s657_s25 + $0x20] sm:$0xff] %v384_v35  ;;  %449 = vst [vmem:[%s657_s25 + $0x28] sm:$0xff] %v385_v36  ;;  %v324_v48 = vadd.f32 %v634_v1, %v253_v40  ;;  %v325_v49 = vadd.f32 %v634_v1, %v254_v41  ;;  %v326_v50 = vadd.f32 %v634_v1, %v255_v42  ;;  %v199_v27 = vld [vmem:[%s629_s20 + $0xc8] sm:$0xff]  ;;  %v200_v28 = vld [vmem:[%s629_s20 + $0xd0] sm:$0xff] }
  0x18   : > { %450 = vst [vmem:[%s657_s25 + $0x30] sm:$0xff] %v386_v39  ;;  %v259_v51 = vmul.f32 %v624_v0, %v188_v38  ;;  %451 = vst [vmem:[%s657_s25 + $0x38] sm:$0xff] %v387_v44  ;;  %v327_v52 = vadd.f32 %v634_v1, %v256_v45  ;;  %v328_v53 = vadd.f32 %v634_v1, %v257_v46  ;;  %v201_v33 = vld [vmem:[%s629_s20 + $0xd8] sm:$0xff]  ;;  %v202_v34 = vld [vmem:[%s629_s20 + $0xe0] sm:$0xff] }
  0x19   : > { %v329_v54 = vadd.f32 %v634_v1, %v258_v47  ;;  %v260_v55 = vmul.f32 %v624_v0, %v189_v43  ;;  %v388_v59 = vmax.f32 %v324_v48, 0.0  ;;  %v389_v60 = vmax.f32 %v325_v49, 0.0  ;;  %v203_v35 = vld [vmem:[%s629_s20 + $0xe8] sm:$0xff]  ;;  %v204_v40 = vld [vmem:[%s629_s20 + $0xf0] sm:$0xff]  ;;  %v205_v45 = vld [vmem:[%s629_s20 + $0xf8] sm:$0xff] }
  0x1a   : > { %v390_v61 = vmax.f32 %v326_v50, 0.0  ;;  %v330_v62 = vadd.f32 %v634_v1, %v259_v51  ;;  %v391_v4 = vmax.f32 %v327_v52, 0.0  ;;  %v392_v5 = vmax.f32 %v328_v53, 0.0 }
  0x1b   : > { %v393_v6 = vmax.f32 %v329_v54, 0.0  ;;  %v331_v7 = vadd.f32 %v634_v1, %v260_v55  ;;  %452 = vst [vmem:[%s657_s25 + $0x40] sm:$0xff] %v388_v59  ;;  %453 = vst [vmem:[%s657_s25 + $0x48] sm:$0xff] %v389_v60  ;;  %v261_v10 = vmul.f32 %v624_v0, %v190_v56  ;;  %v262_v11 = vmul.f32 %v624_v0, %v191_v57  ;;  %v207_v59 = vld [vmem:[%s629_s20 + $0x108] sm:$0xff]  ;;  %v208_v60 = vld [vmem:[%s629_s20 + $0x110] sm:$0xff] }
  0x1c   : > { %454 = vst [vmem:[%s657_s25 + $0x50] sm:$0xff] %v390_v61  ;;  %v394_v9 = vmax.f32 %v330_v62, 0.0  ;;  %v263_v12 = vmul.f32 %v624_v0, %v192_v58  ;;  %455 = vst [vmem:[%s657_s25 + $0x58] sm:$0xff] %v391_v4  ;;  %v264_v15 = vmul.f32 %v624_v0, %v193_v63  ;;  %v265_v16 = vmul.f32 %v624_v0, %v194_v2  ;;  %v206_v58 = vld [vmem:[%s629_s20 + $0x100] sm:$0xff] }
  0x1d   : > { %456 = vst [vmem:[%s657_s25 + $0x60] sm:$0xff] %v392_v5  ;;  %457 = vst [vmem:[%s657_s25 + $0x68] sm:$0xff] %v393_v6  ;;  %v395_v14 = vmax.f32 %v331_v7, 0.0  ;;  %v266_v17 = vmul.f32 %v624_v0, %v195_v3  ;;  %v332_v18 = vadd.f32 %v634_v1, %v261_v10  ;;  %v333_v19 = vadd.f32 %v634_v1, %v262_v11  ;;  %v209_v3 = vld [vmem:[%s629_s20 + $0x118] sm:$0xff]  ;;  %v210_v4 = vld [vmem:[%s629_s20 + $0x120] sm:$0xff] }
  0x1e   : > { %458 = vst [vmem:[%s657_s25 + $0x70] sm:$0xff] %v394_v9  ;;  %v334_v20 = vadd.f32 %v634_v1, %v263_v12  ;;  %v267_v21 = vmul.f32 %v624_v0, %v196_v8  ;;  %v335_v22 = vadd.f32 %v634_v1, %v264_v15  ;;  %v336_v23 = vadd.f32 %v634_v1, %v265_v16  ;;  %v211_v5 = vld [vmem:[%s629_s20 + $0x128] sm:$0xff]  ;;  %v212_v10 = vld [vmem:[%s629_s20 + $0x130] sm:$0xff]  ;;  %v213_v15 = vld [vmem:[%s629_s20 + $0x138] sm:$0xff] }
  0x1f   : > { %459 = vst [vmem:[%s657_s25 + $0x78] sm:$0xff] %v395_v14  ;;  %v337_v24 = vadd.f32 %v634_v1, %v266_v17  ;;  %v268_v25 = vmul.f32 %v624_v0, %v197_v13  ;;  %v396_v29 = vmax.f32 %v332_v18, 0.0  ;;  %v397_v30 = vmax.f32 %v333_v19, 0.0 }
  0x20   : > { %v398_v31 = vmax.f32 %v334_v20, 0.0  ;;  %v338_v32 = vadd.f32 %v634_v1, %v267_v21  ;;  %v399_v36 = vmax.f32 %v335_v22, 0.0  ;;  %v400_v37 = vmax.f32 %v336_v23, 0.0 }
  0x21   : > { %v401_v38 = vmax.f32 %v337_v24, 0.0  ;;  %v339_v39 = vadd.f32 %v634_v1, %v268_v25  ;;  %460 = vst [vmem:[%s657_s25 + $0x80] sm:$0xff] %v396_v29  ;;  %461 = vst [vmem:[%s657_s25 + $0x88] sm:$0xff] %v397_v30  ;;  %v269_v42 = vmul.f32 %v624_v0, %v198_v26  ;;  %v270_v43 = vmul.f32 %v624_v0, %v199_v27  ;;  %v215_v29 = vld [vmem:[%s629_s20 + $0x148] sm:$0xff]  ;;  %v216_v30 = vld [vmem:[%s629_s20 + $0x150] sm:$0xff] }
  0x22   : > { %462 = vst [vmem:[%s657_s25 + $0x90] sm:$0xff] %v398_v31  ;;  %v402_v41 = vmax.f32 %v338_v32, 0.0  ;;  %v271_v44 = vmul.f32 %v624_v0, %v200_v28  ;;  %463 = vst [vmem:[%s657_s25 + $0x98] sm:$0xff] %v399_v36  ;;  %v272_v47 = vmul.f32 %v624_v0, %v201_v33  ;;  %v273_v48 = vmul.f32 %v624_v0, %v202_v34  ;;  %v214_v28 = vld [vmem:[%s629_s20 + $0x140] sm:$0xff] }
  0x23   : > { %464 = vst [vmem:[%s657_s25 + $0xa0] sm:$0xff] %v400_v37  ;;  %465 = vst [vmem:[%s657_s25 + $0xa8] sm:$0xff] %v401_v38  ;;  %v403_v46 = vmax.f32 %v339_v39, 0.0  ;;  %v274_v49 = vmul.f32 %v624_v0, %v203_v35  ;;  %v340_v50 = vadd.f32 %v634_v1, %v269_v42  ;;  %v341_v51 = vadd.f32 %v634_v1, %v270_v43  ;;  %v217_v35 = vld [vmem:[%s629_s20 + $0x158] sm:$0xff]  ;;  %v218_v36 = vld [vmem:[%s629_s20 + $0x160] sm:$0xff] }
  0x24   : > { %466 = vst [vmem:[%s657_s25 + $0xb0] sm:$0xff] %v402_v41  ;;  %v342_v52 = vadd.f32 %v634_v1, %v271_v44  ;;  %v275_v53 = vmul.f32 %v624_v0, %v204_v40  ;;  %v343_v54 = vadd.f32 %v634_v1, %v272_v47  ;;  %v344_v55 = vadd.f32 %v634_v1, %v273_v48  ;;  %v219_v37 = vld [vmem:[%s629_s20 + $0x168] sm:$0xff]  ;;  %v220_v42 = vld [vmem:[%s629_s20 + $0x170] sm:$0xff]  ;;  %v221_v47 = vld [vmem:[%s629_s20 + $0x178] sm:$0xff] }
  0x25   : > { %467 = vst [vmem:[%s657_s25 + $0xb8] sm:$0xff] %v403_v46  ;;  %v345_v56 = vadd.f32 %v634_v1, %v274_v49  ;;  %v276_v57 = vmul.f32 %v624_v0, %v205_v45  ;;  %v404_v61 = vmax.f32 %v340_v50, 0.0  ;;  %v405_v62 = vmax.f32 %v341_v51, 0.0 }
  0x26   : > { %v406_v63 = vmax.f32 %v342_v52, 0.0  ;;  %v346_v2 = vadd.f32 %v634_v1, %v275_v53  ;;  %v407_v6 = vmax.f32 %v343_v54, 0.0  ;;  %v408_v7 = vmax.f32 %v344_v55, 0.0 }
  0x27   : > { %v409_v8 = vmax.f32 %v345_v56, 0.0  ;;  %v347_v9 = vadd.f32 %v634_v1, %v276_v57  ;;  %468 = vst [vmem:[%s657_s25 + $0xc0] sm:$0xff] %v404_v61  ;;  %469 = vst [vmem:[%s657_s25 + $0xc8] sm:$0xff] %v405_v62  ;;  %v277_v12 = vmul.f32 %v624_v0, %v206_v58  ;;  %v278_v13 = vmul.f32 %v624_v0, %v207_v59  ;;  %v223_v61 = vld [vmem:[%s629_s20 + $0x188] sm:$0xff]  ;;  %v224_v62 = vld [vmem:[%s629_s20 + $0x190] sm:$0xff] }
  0x28   : > { %470 = vst [vmem:[%s657_s25 + $0xd0] sm:$0xff] %v406_v63  ;;  %v410_v11 = vmax.f32 %v346_v2, 0.0  ;;  %v279_v14 = vmul.f32 %v624_v0, %v208_v60  ;;  %471 = vst [vmem:[%s657_s25 + $0xd8] sm:$0xff] %v407_v6  ;;  %v280_v17 = vmul.f32 %v624_v0, %v209_v3  ;;  %v281_v18 = vmul.f32 %v624_v0, %v210_v4  ;;  %v222_v60 = vld [vmem:[%s629_s20 + $0x180] sm:$0xff] }
  0x29   : > { %472 = vst [vmem:[%s657_s25 + $0xe0] sm:$0xff] %v408_v7  ;;  %473 = vst [vmem:[%s657_s25 + $0xe8] sm:$0xff] %v409_v8  ;;  %v411_v16 = vmax.f32 %v347_v9, 0.0  ;;  %v282_v19 = vmul.f32 %v624_v0, %v211_v5  ;;  %v348_v20 = vadd.f32 %v634_v1, %v277_v12  ;;  %v349_v21 = vadd.f32 %v634_v1, %v278_v13  ;;  %v225_v5 = vld [vmem:[%s629_s20 + $0x198] sm:$0xff]  ;;  %v226_v6 = vld [vmem:[%s629_s20 + $0x1a0] sm:$0xff] }
  0x2a   : > { %474 = vst [vmem:[%s657_s25 + $0xf0] sm:$0xff] %v410_v11  ;;  %v350_v22 = vadd.f32 %v634_v1, %v279_v14  ;;  %v283_v23 = vmul.f32 %v624_v0, %v212_v10  ;;  %v351_v24 = vadd.f32 %v634_v1, %v280_v17  ;;  %v352_v25 = vadd.f32 %v634_v1, %v281_v18  ;;  %v227_v7 = vld [vmem:[%s629_s20 + $0x1a8] sm:$0xff]  ;;  %v228_v12 = vld [vmem:[%s629_s20 + $0x1b0] sm:$0xff]  ;;  %v229_v17 = vld [vmem:[%s629_s20 + $0x1b8] sm:$0xff] }
  0x2b   : > { %475 = vst [vmem:[%s657_s25 + $0xf8] sm:$0xff] %v411_v16  ;;  %v353_v26 = vadd.f32 %v634_v1, %v282_v19  ;;  %v284_v27 = vmul.f32 %v624_v0, %v213_v15  ;;  %v412_v31 = vmax.f32 %v348_v20, 0.0  ;;  %v413_v32 = vmax.f32 %v349_v21, 0.0 }
  0x2c   : > { %v414_v33 = vmax.f32 %v350_v22, 0.0  ;;  %v354_v34 = vadd.f32 %v634_v1, %v283_v23  ;;  %v415_v38 = vmax.f32 %v351_v24, 0.0  ;;  %v416_v39 = vmax.f32 %v352_v25, 0.0 }
  0x2d   : > { %v417_v40 = vmax.f32 %v353_v26, 0.0  ;;  %v355_v41 = vadd.f32 %v634_v1, %v284_v27  ;;  %476 = vst [vmem:[%s657_s25 + $0x100] sm:$0xff] %v412_v31  ;;  %477 = vst [vmem:[%s657_s25 + $0x108] sm:$0xff] %v413_v32  ;;  %v285_v44 = vmul.f32 %v624_v0, %v214_v28  ;;  %v286_v45 = vmul.f32 %v624_v0, %v215_v29  ;;  %v231_v31 = vld [vmem:[%s629_s20 + $0x1c8] sm:$0xff]  ;;  %v232_v32 = vld [vmem:[%s629_s20 + $0x1d0] sm:$0xff] }
  0x2e   : > { %478 = vst [vmem:[%s657_s25 + $0x110] sm:$0xff] %v414_v33  ;;  %v418_v43 = vmax.f32 %v354_v34, 0.0  ;;  %v287_v46 = vmul.f32 %v624_v0, %v216_v30  ;;  %479 = vst [vmem:[%s657_s25 + $0x118] sm:$0xff] %v415_v38  ;;  %v288_v49 = vmul.f32 %v624_v0, %v217_v35  ;;  %v289_v50 = vmul.f32 %v624_v0, %v218_v36  ;;  %v230_v30 = vld [vmem:[%s629_s20 + $0x1c0] sm:$0xff] }
  0x2f   : > { %480 = vst [vmem:[%s657_s25 + $0x120] sm:$0xff] %v416_v39  ;;  %481 = vst [vmem:[%s657_s25 + $0x128] sm:$0xff] %v417_v40  ;;  %v419_v48 = vmax.f32 %v355_v41, 0.0  ;;  %v290_v51 = vmul.f32 %v624_v0, %v219_v37  ;;  %v356_v52 = vadd.f32 %v634_v1, %v285_v44  ;;  %v357_v53 = vadd.f32 %v634_v1, %v286_v45  ;;  %v233_v37 = vld [vmem:[%s629_s20 + $0x1d8] sm:$0xff]  ;;  %v234_v38 = vld [vmem:[%s629_s20 + $0x1e0] sm:$0xff] }
  0x30   : > { %482 = vst [vmem:[%s657_s25 + $0x130] sm:$0xff] %v418_v43  ;;  %v358_v54 = vadd.f32 %v634_v1, %v287_v46  ;;  %v291_v55 = vmul.f32 %v624_v0, %v220_v42  ;;  %v359_v56 = vadd.f32 %v634_v1, %v288_v49  ;;  %v360_v57 = vadd.f32 %v634_v1, %v289_v50  ;;  %v235_v39 = vld [vmem:[%s629_s20 + $0x1e8] sm:$0xff]  ;;  %v236_v44 = vld [vmem:[%s629_s20 + $0x1f0] sm:$0xff]  ;;  %v237_v49 = vld [vmem:[%s629_s20 + $0x1f8] sm:$0xff] }
  0x31   : > { %483 = vst [vmem:[%s657_s25 + $0x138] sm:$0xff] %v419_v48  ;;  %v361_v58 = vadd.f32 %v634_v1, %v290_v51  ;;  %v292_v59 = vmul.f32 %v624_v0, %v221_v47  ;;  %v420_v63 = vmax.f32 %v356_v52, 0.0  ;;  %v421_v2 = vmax.f32 %v357_v53, 0.0 }
  0x32   : > { %v422_v3 = vmax.f32 %v358_v54, 0.0  ;;  %v362_v4 = vadd.f32 %v634_v1, %v291_v55  ;;  %v423_v8 = vmax.f32 %v359_v56, 0.0  ;;  %v424_v9 = vmax.f32 %v360_v57, 0.0 }
  0x33   : > { %v425_v10 = vmax.f32 %v361_v58, 0.0  ;;  %v363_v11 = vadd.f32 %v634_v1, %v292_v59  ;;  %484 = vst [vmem:[%s657_s25 + $0x140] sm:$0xff] %v420_v63  ;;  %485 = vst [vmem:[%s657_s25 + $0x148] sm:$0xff] %v421_v2  ;;  %v293_v14 = vmul.f32 %v624_v0, %v222_v60  ;;  %v294_v15 = vmul.f32 %v624_v0, %v223_v61 }
  0x34   : > { %486 = vst [vmem:[%s657_s25 + $0x150] sm:$0xff] %v422_v3  ;;  %v426_v13 = vmax.f32 %v362_v4, 0.0  ;;  %v295_v16 = vmul.f32 %v624_v0, %v224_v62  ;;  %487 = vst [vmem:[%s657_s25 + $0x158] sm:$0xff] %v423_v8  ;;  %v296_v19 = vmul.f32 %v624_v0, %v225_v5  ;;  %v297_v20 = vmul.f32 %v624_v0, %v226_v6 }
  0x35   : > { %488 = vst [vmem:[%s657_s25 + $0x160] sm:$0xff] %v424_v9  ;;  %489 = vst [vmem:[%s657_s25 + $0x168] sm:$0xff] %v425_v10  ;;  %v427_v18 = vmax.f32 %v363_v11, 0.0  ;;  %v298_v21 = vmul.f32 %v624_v0, %v227_v7  ;;  %v364_v22 = vadd.f32 %v634_v1, %v293_v14  ;;  %v365_v23 = vadd.f32 %v634_v1, %v294_v15 }
  0x36   : > { %490 = vst [vmem:[%s657_s25 + $0x170] sm:$0xff] %v426_v13  ;;  %v366_v24 = vadd.f32 %v634_v1, %v295_v16  ;;  %v299_v25 = vmul.f32 %v624_v0, %v228_v12  ;;  %v367_v26 = vadd.f32 %v634_v1, %v296_v19  ;;  %v368_v27 = vadd.f32 %v634_v1, %v297_v20 }
  0x37   : > { %491 = vst [vmem:[%s657_s25 + $0x178] sm:$0xff] %v427_v18  ;;  %v369_v28 = vadd.f32 %v634_v1, %v298_v21  ;;  %v300_v29 = vmul.f32 %v624_v0, %v229_v17  ;;  %v428_v33 = vmax.f32 %v364_v22, 0.0  ;;  %v429_v34 = vmax.f32 %v365_v23, 0.0 }
  0x38   : > { %v430_v35 = vmax.f32 %v366_v24, 0.0  ;;  %v370_v36 = vadd.f32 %v634_v1, %v299_v25  ;;  %v431_v40 = vmax.f32 %v367_v26, 0.0  ;;  %v432_v41 = vmax.f32 %v368_v27, 0.0 }
  0x39   : > { %v433_v42 = vmax.f32 %v369_v28, 0.0  ;;  %v371_v43 = vadd.f32 %v634_v1, %v300_v29  ;;  %492 = vst [vmem:[%s657_s25 + $0x180] sm:$0xff] %v428_v33  ;;  %493 = vst [vmem:[%s657_s25 + $0x188] sm:$0xff] %v429_v34  ;;  %v301_v46 = vmul.f32 %v624_v0, %v230_v30  ;;  %v302_v47 = vmul.f32 %v624_v0, %v231_v31 }
  0x3a   : > { %494 = vst [vmem:[%s657_s25 + $0x190] sm:$0xff] %v430_v35  ;;  %v434_v45 = vmax.f32 %v370_v36, 0.0  ;;  %v303_v48 = vmul.f32 %v624_v0, %v232_v32  ;;  %495 = vst [vmem:[%s657_s25 + $0x198] sm:$0xff] %v431_v40  ;;  %v304_v51 = vmul.f32 %v624_v0, %v233_v37  ;;  %v305_v52 = vmul.f32 %v624_v0, %v234_v38 }
  0x3b   : > { %496 = vst [vmem:[%s657_s25 + $0x1a0] sm:$0xff] %v432_v41  ;;  %497 = vst [vmem:[%s657_s25 + $0x1a8] sm:$0xff] %v433_v42  ;;  %v435_v50 = vmax.f32 %v371_v43, 0.0  ;;  %v306_v53 = vmul.f32 %v624_v0, %v235_v39  ;;  %v372_v54 = vadd.f32 %v634_v1, %v301_v46  ;;  %v373_v55 = vadd.f32 %v634_v1, %v302_v47 }
  0x3c   : > { %498 = vst [vmem:[%s657_s25 + $0x1b0] sm:$0xff] %v434_v45  ;;  %v374_v56 = vadd.f32 %v634_v1, %v303_v48  ;;  %v307_v57 = vmul.f32 %v624_v0, %v236_v44  ;;  %v375_v58 = vadd.f32 %v634_v1, %v304_v51  ;;  %v376_v59 = vadd.f32 %v634_v1, %v305_v52 }
  0x3d   : > { %499 = vst [vmem:[%s657_s25 + $0x1b8] sm:$0xff] %v435_v50  ;;  %v377_v60 = vadd.f32 %v634_v1, %v306_v53  ;;  %v308_v61 = vmul.f32 %v624_v0, %v237_v49  ;;  %v436_v62 = vmax.f32 %v372_v54, 0.0  ;;  %v437_v63 = vmax.f32 %v373_v55, 0.0 }
  0x3e   : > { %v438_v2 = vmax.f32 %v374_v56, 0.0  ;;  %v378_v3 = vadd.f32 %v634_v1, %v307_v57  ;;  %v439_v4 = vmax.f32 %v375_v58, 0.0  ;;  %v440_v5 = vmax.f32 %v376_v59, 0.0 }
  0x3f   : > { %v441_v6 = vmax.f32 %v377_v60, 0.0  ;;  %v379_v7 = vadd.f32 %v634_v1, %v308_v61  ;;  %500 = vst [vmem:[%s657_s25 + $0x1c0] sm:$0xff] %v436_v62  ;;  %501 = vst [vmem:[%s657_s25 + $0x1c8] sm:$0xff] %v437_v63 }
  0x40   : > { %502 = vst [vmem:[%s657_s25 + $0x1d0] sm:$0xff] %v438_v2  ;;  %v442_v8 = vmax.f32 %v378_v3, 0.0  ;;  %503 = vst [vmem:[%s657_s25 + $0x1d8] sm:$0xff] %v439_v4 }
  0x41   : > { %504 = vst [vmem:[%s657_s25 + $0x1e0] sm:$0xff] %v440_v5  ;;  %505 = vst [vmem:[%s657_s25 + $0x1e8] sm:$0xff] %v441_v6  ;;  %v443_v0 = vmax.f32 %v379_v7, 0.0 }
  0x42   : > { %506 = vst [vmem:[%s657_s25 + $0x1f0] sm:$0xff] %v442_v8 }
  0x43   : > { %507 = vst [vmem:[%s657_s25 + $0x1f8] sm:$0xff] %v443_v0 }
  0x44 PF: > { %s13_s12 = sadd.s32 1, %s591_s12  }
  0x45   : > { %p10_p4 = scmp.ge.s32.totalorder %s13_s12, 10  }
  0x47   :  { %12 = sbr.rel (!%p10_p4) target bundleno = 1 (0x1), region = 62 }

// kernel: conv3d_bn_relu.2
= control target key start
LH: loop header
LB: loop body
LE: loop exit
PB: predicated region body
PF: predicated region fallthrough
CT: control target
= control target key end

     0   :  { %s1417_s12 = smov 0   ;;  %s1762_s0 = inlined_call_operand.vmem [shape: bf16[4096,128], index: 0, kind: input, shape index: {}]   ;;  %s1763_s1 = inlined_call_operand.vmem [shape: bf16[128,128], index: 1, kind: input, shape index: {}]   ;;  %s1764_s2 = inlined_call_operand.vmem [shape: f32[4096,128], index: 2, kind: output, shape index: {0}]   ;;  %s1765_s3 = inlined_call_operand.vmem [shape: f32[8,8,128], index: 3, kind: output, shape index: {1}]  }
   0x1 LB: > { %s1423_s13 = sadd.s32 4294967295, %s1395_s12   ;;  %p1157_p0 = scmp.ge.s32.totalorder %s1395_s12, 1  ;;  %s1395_s12 = sphi %s1417_s12, %s14_s12  }
   0x2   : > { %p141_p1 = scmp.lt.s32.totalorder %s1395_s12, 9 }
   0x4   : > { %p142_p2 = pnand %p1157_p0, %p141_p1 }
   0x5   : > { %s1158_s16 = sshll.u32 (!%p142_p2), %s1423_s13, 6  ;;  %p181_p4 = scmp.lt.s32.totalorder (!%p142_p2), %s1423_s13, 7 }
   0x6   : > { %145 = sbr.rel (%p142_p2) target bundleno = 386 (0x182), region = 28  ;;  %p170_p3 = scmp.lt.s32.totalorder (!%p142_p2), %s1158_s16, 511 }
   0xb   : > { %v1349_v0 = vld [vmem:[%s1763_s1 + $0x38] sm:$0xff]   ;;  %v1350_v1 = vld [vmem:[%s1763_s1 + $0x30] sm:$0xff]   ;;  %s1767_s16 = smov (!%p170_p3, %s1158_s16), 511  ;;  %v1351_v2 = vld [vmem:[%s1763_s1 + $0x28] sm:$0xff]   ;;  %s1769_s13 = smov (!%p181_p4, %s1423_s13), 7  ;;  %vm1061_vm0 = vcmask 1040384  }
   0xc   : > { %1245 = vmatprep.subr.bf16.mxu0 %v1349_v0  ;;  %1325 = vmatprep.subr.bf16.mxu1 %v1349_v0  ;;  %s1159_s21 = sshll.u32 %s1767_s16, 2  ;;  %v1352_v3 = vld [vmem:[%s1763_s1 + $0x20] sm:$0xff]   ;;  %v1353_v5 = vld [vmem:[%s1763_s1 + $0x18] sm:$0xff]   ;;  %v1354_v6 = vld [vmem:[%s1763_s1 + $0x10] sm:$0xff]   ;;  %s1161_s8 = sshll.u32 %s1767_s16, 3  ;;  %vm1063_vm1 = vcmask 1041408  }
   0xd   : > { %1246 = vmatpush3.bf16.msra.mxu0 %v1349_v0  ;;  %1333 = vmatpush3.bf16.msra.mxu1 %v1349_v0  ;;  %s1443_s24 = scalar_lea.vmem %s1762_s0, %s1159_s21  ;;  %v1355_v7 = vld [vmem:[%s1763_s1 + $0x8] sm:$0xff]   ;;  %v1356_v8 = vld [vmem:[%s1763_s1] sm:$0xff]   ;;  %s1496_s11 = scalar_lea.vmem %s1764_s2, %s1161_s8 }
   0xe   : > { %1247 = vmatprep.subr.bf16.mxu0 %v1350_v1  ;;  %1326 = vmatprep.subr.bf16.mxu1 %v1350_v1  ;;  %v1357_v4 = vld [vmem:[%s1443_s24] sm:$0xff]   ;;  %v1358_v10 = vld [vmem:[%s1443_s24 + $0x8] sm:$0xff]   ;;  %v1359_v11 = vld [vmem:[%s1443_s24 + $0x10] sm:$0xff]   ;;  %s1162_s14 = sshll.u32 %s1769_s13, 3 }
   0xf   : > { %1261 = vmatprep.mubr.bf16.mxu0 %v1357_v4  ;;  %v1373_v9 = vld [vmem:[%s1443_s24 + $0x80] sm:$0xff]   ;;  %v1374_v12 = vld [vmem:[%s1443_s24 + $0x88] sm:$0xff]   ;;  %v1375_v13 = vld [vmem:[%s1443_s24 + $0x90] sm:$0xff]   ;;  %s184_s17 = scalar_lea.vmem %s1765_s3, %s1162_s14 }
  0x10   : > { %1293 = vmatprep.mubr.bf16.mxu1 %v1373_v9  ;;  %v1360_v14 = vld [vmem:[%s1443_s24 + $0x18] sm:$0xff]   ;;  %v1361_v15 = vld [vmem:[%s1443_s24 + $0x20] sm:$0xff]   ;;  %v1362_v18 = vld [vmem:[%s1443_s24 + $0x28] sm:$0xff]  }
  0x11   : > { %1248 = vmatpush3.bf16.msra.mxu0 %v1350_v1  ;;  %1334 = vmatpush3.bf16.msra.mxu1 %v1350_v1  ;;  %v1376_v16 = vld [vmem:[%s1443_s24 + $0x98] sm:$0xff]   ;;  %v1377_v17 = vld [vmem:[%s1443_s24 + $0xa0] sm:$0xff]   ;;  %v1378_v19 = vld [vmem:[%s1443_s24 + $0xa8] sm:$0xff]  }
  0x12   : > { %1249 = vmatprep.subr.bf16.mxu0 %v1351_v2  ;;  %1327 = vmatprep.subr.bf16.mxu1 %v1351_v2  ;;  %v1363_v20 = vld [vmem:[%s1443_s24 + $0x30] sm:$0xff]   ;;  %v1364_v22 = vld [vmem:[%s1443_s24 + $0x38] sm:$0xff]   ;;  %v1365_v24 = vld [vmem:[%s1443_s24 + $0x40] sm:$0xff]  }
  0x13   : > { %v1379_v21 = vld [vmem:[%s1443_s24 + $0xb0] sm:$0xff]   ;;  %v1380_v23 = vld [vmem:[%s1443_s24 + $0xb8] sm:$0xff]   ;;  %v1381_v25 = vld [vmem:[%s1443_s24 + $0xc0] sm:$0xff]  }
  0x14   : > { %v1366_v26 = vld [vmem:[%s1443_s24 + $0x48] sm:$0xff]   ;;  %v1367_v28 = vld [vmem:[%s1443_s24 + $0x50] sm:$0xff]   ;;  %v1368_v30 = vld [vmem:[%s1443_s24 + $0x58] sm:$0xff]  }
  0x15   : > { %1250 = vmatpush3.bf16.msra.mxu0 %v1351_v2  ;;  %1335 = vmatpush3.bf16.msra.mxu1 %v1351_v2  ;;  %v1382_v27 = vld [vmem:[%s1443_s24 + $0xc8] sm:$0xff]   ;;  %v1383_v29 = vld [vmem:[%s1443_s24 + $0xd0] sm:$0xff]   ;;  %v1384_v31 = vld [vmem:[%s1443_s24 + $0xd8] sm:$0xff]  }
  0x16   : > { %1251 = vmatprep.subr.bf16.mxu0 %v1352_v3  ;;  %1328 = vmatprep.subr.bf16.mxu1 %v1352_v3  ;;  %v1369_v32 = vld [vmem:[%s1443_s24 + $0x60] sm:$0xff]   ;;  %v1370_v34 = vld [vmem:[%s1443_s24 + $0x68] sm:$0xff]   ;;  %v1371_v36 = vld [vmem:[%s1443_s24 + $0x70] sm:$0xff]  }
  0x17   : > { %v1385_v33 = vld [vmem:[%s1443_s24 + $0xe0] sm:$0xff]   ;;  %v1386_v35 = vld [vmem:[%s1443_s24 + $0xe8] sm:$0xff]   ;;  %v1387_v37 = vld [vmem:[%s1443_s24 + $0xf0] sm:$0xff]  }
  0x18   : > { %v1372_v38 = vld [vmem:[%s1443_s24 + $0x78] sm:$0xff]  }
  0x19   : > { %1252 = vmatpush3.bf16.msra.mxu0 %v1352_v3  ;;  %1336 = vmatpush3.bf16.msra.mxu1 %v1352_v3  ;;  %v1388_v39 = vld [vmem:[%s1443_s24 + $0xf8] sm:$0xff]  }
  0x1a   : > { %1253 = vmatprep.subr.bf16.mxu0 %v1353_v5  ;;  %1329 = vmatprep.subr.bf16.mxu1 %v1353_v5 }
  0x1d   : > { %1254 = vmatpush3.bf16.msra.mxu0 %v1353_v5  ;;  %1337 = vmatpush3.bf16.msra.mxu1 %v1353_v5 }
  0x1e   : > { %1255 = vmatprep.subr.bf16.mxu0 %v1354_v6  ;;  %1330 = vmatprep.subr.bf16.mxu1 %v1354_v6 }
  0x21   : > { %1256 = vmatpush3.bf16.msra.mxu0 %v1354_v6  ;;  %1338 = vmatpush3.bf16.msra.mxu1 %v1354_v6 }
  0x22   : > { %1257 = vmatprep.subr.bf16.mxu0 %v1355_v7  ;;  %1331 = vmatprep.subr.bf16.mxu1 %v1355_v7 }
  0x25   : > { %1258 = vmatpush3.bf16.msra.mxu0 %v1355_v7  ;;  %1339 = vmatpush3.bf16.msra.mxu1 %v1355_v7 }
  0x26   : > { %1259 = vmatprep.subr.bf16.mxu0 %v1356_v8  ;;  %1332 = vmatprep.subr.bf16.mxu1 %v1356_v8 }
  0x29   : > { %1260 = vmatpush3.bf16.msra.mxu0 %v1356_v8  ;;  %1340 = vmatpush3.bf16.msra.mxu1 %v1356_v8 }
  0x2c   : > { %1262 = vmatmul.mubr.bf16.vlgmr.msra.gmra.mxu0 %v1358_v10  ;;  %1294 = vmatmul.mubr.bf16.vlgmr.msra.gmra.mxu1 %v1374_v12 }
  0x2d   : > { %1265 = vmatprep.mubr.bf16.mxu0 %v1359_v11  ;;  %1297 = vmatprep.mubr.bf16.mxu1 %v1375_v13 }
  0x34   : > { %1266 = vmatmul.mubr.bf16.gmra.mxu0 %v1360_v14  ;;  %1298 = vmatmul.mubr.bf16.gmra.mxu1 %v1376_v16 }
  0x35   : > { %1269 = vmatprep.mubr.bf16.mxu0 %v1361_v15  ;;  %1301 = vmatprep.mubr.bf16.mxu1 %v1377_v17 }
  0x3c   : > { %1270 = vmatmul.mubr.bf16.gmra.mxu0 %v1362_v18  ;;  %1302 = vmatmul.mubr.bf16.gmra.mxu1 %v1378_v19 }
  0x3d   : > { %1273 = vmatprep.mubr.bf16.mxu0 %v1363_v20  ;;  %1305 = vmatprep.mubr.bf16.mxu1 %v1379_v21 }
  0x44   : > { %1274 = vmatmul.mubr.bf16.gmra.mxu0 %v1364_v22  ;;  %1306 = vmatmul.mubr.bf16.gmra.mxu1 %v1380_v23 }
  0x45   : > { %1277 = vmatprep.mubr.bf16.mxu0 %v1365_v24  ;;  %1309 = vmatprep.mubr.bf16.mxu1 %v1381_v25 }
  0x4c   : > { %1278 = vmatmul.mubr.bf16.gmra.mxu0 %v1366_v26  ;;  %1310 = vmatmul.mubr.bf16.gmra.mxu1 %v1382_v27 }
  0x4d   : > { %1281 = vmatprep.mubr.bf16.mxu0 %v1367_v28  ;;  %1313 = vmatprep.mubr.bf16.mxu1 %v1383_v29 }
  0x54   : > { %1282 = vmatmul.mubr.bf16.gmra.mxu0 %v1368_v30  ;;  %1314 = vmatmul.mubr.bf16.gmra.mxu1 %v1384_v31 }
  0x55   : > { %1285 = vmatprep.mubr.bf16.mxu0 %v1369_v32  ;;  %1317 = vmatprep.mubr.bf16.mxu1 %v1385_v33 }
  0x5c   : > { %1286 = vmatmul.mubr.bf16.gmra.mxu0 %v1370_v34  ;;  %1318 = vmatmul.mubr.bf16.gmra.mxu1 %v1386_v35 }
  0x5d   : > { %1289 = vmatprep.mubr.bf16.mxu0 %v1371_v36  ;;  %1321 = vmatprep.mubr.bf16.mxu1 %v1387_v37 }
  0x64   : > { %1290 = vmatmul.mubr.bf16.gmra.mxu0 %v1372_v38  ;;  %1322 = vmatmul.mubr.bf16.gmra.mxu1 %v1388_v39 }
  0xec   : > { %v1263_v40 = vpop.f32.mrf.mxu0  ;;  %v1498_v41 = vpop.f32.mrf.mxu1 }
  0xed   : > { %797 = vst [vmem:[%s1496_s11 + $0x10] sm:$0xff] %v1263_v40  ;;  %829 = vst [vmem:[%s1496_s11 + $0x110] sm:$0xff] %v1498_v41  ;;  %v930_v53 = vmul.f32 %v1263_v40, %v1263_v40 }
  0xee   : > { %v540_v42 = vpop.f32.mrf.mxu0  ;;  %v1503_v43 = vpop.f32.mrf.mxu1 }
  0xef   : > { %795 = vst [vmem:[%s1496_s11] sm:$0xff] %v540_v42  ;;  %827 = vst [vmem:[%s1496_s11 + $0x100] sm:$0xff] %v1503_v43  ;;  %v928_v48 = vmul.f32 %v540_v42, %v540_v42 }
  0xf0   : > { %v1264_v44 = vpop.f32.mrf.mxu0  ;;  %v1508_v45 = vpop.f32.mrf.mxu1 }
  0xf1   : > { %798 = vst [vmem:[%s1496_s11 + $0x18] sm:$0xff] %v1264_v44  ;;  %830 = vst [vmem:[%s1496_s11 + $0x118] sm:$0xff] %v1508_v45  ;;  %v931_v58 = vmul.f32 %v1264_v44, %v1264_v44 }
  0xf2   : > { %v543_v46 = vpop.f32.mrf.mxu0  ;;  %v1513_v47 = vpop.f32.mrf.mxu1 }
  0xf3   : > { %796 = vst [vmem:[%s1496_s11 + $0x8] sm:$0xff] %v543_v46  ;;  %v859_v49 = vadd.f32 %v543_v46, %v540_v42  ;;  %v929_v50 = vmul.f32 %v543_v46, %v543_v46  ;;  %828 = vst [vmem:[%s1496_s11 + $0x108] sm:$0xff] %v1513_v47 }
  0xf4   : > { %v1267_v51 = vpop.f32.mrf.mxu0  ;;  %v1518_v52 = vpop.f32.mrf.mxu1 }
  0xf5   : > { %v860_v54 = vadd.f32 %v1263_v40, %v859_v49  ;;  %v992_v55 = vadd.f32 %v929_v50, %v928_v48  ;;  %801 = vst [vmem:[%s1496_s11 + $0x30] sm:$0xff] %v1267_v51  ;;  %833 = vst [vmem:[%s1496_s11 + $0x130] sm:$0xff] %v1518_v52  ;;  %v934_v9 = vmul.f32 %v1267_v51, %v1267_v51 }
  0xf6   : > { %v556_v56 = vpop.f32.mrf.mxu0  ;;  %v1523_v57 = vpop.f32.mrf.mxu1 }
  0xf7   : > { %v993_v59 = vadd.f32 %v992_v55, %v930_v53  ;;  %799 = vst [vmem:[%s1496_s11 + $0x20] sm:$0xff] %v556_v56  ;;  %v861_v60 = vadd.f32 %v1264_v44, %v860_v54  ;;  %831 = vst [vmem:[%s1496_s11 + $0x120] sm:$0xff] %v1523_v57  ;;  %v932_v0 = vmul.f32 %v556_v56, %v556_v56 }
  0xf8   : > { %v1268_v61 = vpop.f32.mrf.mxu0  ;;  %v1528_v62 = vpop.f32.mrf.mxu1 }
  0xf9   : > { %v862_v63 = vadd.f32 %v861_v60, %v556_v56  ;;  %v994_v1 = vadd.f32 %v993_v59, %v931_v58  ;;  %802 = vst [vmem:[%s1496_s11 + $0x38] sm:$0xff] %v1268_v61  ;;  %834 = vst [vmem:[%s1496_s11 + $0x138] sm:$0xff] %v1528_v62  ;;  %v935_v14 = vmul.f32 %v1268_v61, %v1268_v61 }
  0xfa   : > { %v559_v2 = vpop.f32.mrf.mxu0  ;;  %v1533_v3 = vpop.f32.mrf.mxu1 }
  0xfb   : > { %v995_v4 = vadd.f32 %v994_v1, %v932_v0  ;;  %800 = vst [vmem:[%s1496_s11 + $0x28] sm:$0xff] %v559_v2  ;;  %v863_v5 = vadd.f32 %v862_v63, %v559_v2  ;;  %v933_v6 = vmul.f32 %v559_v2, %v559_v2  ;;  %832 = vst [vmem:[%s1496_s11 + $0x128] sm:$0xff] %v1533_v3 }
  0xfc   : > { %v1271_v7 = vpop.f32.mrf.mxu0  ;;  %v1538_v8 = vpop.f32.mrf.mxu1 }
  0xfd   : > { %v864_v10 = vadd.f32 %v1267_v51, %v863_v5  ;;  %v996_v11 = vadd.f32 %v995_v4, %v933_v6  ;;  %805 = vst [vmem:[%s1496_s11 + $0x50] sm:$0xff] %v1271_v7  ;;  %837 = vst [vmem:[%s1496_s11 + $0x150] sm:$0xff] %v1538_v8  ;;  %v938_v29 = vmul.f32 %v1271_v7, %v1271_v7 }
  0xfe   : > { %v572_v12 = vpop.f32.mrf.mxu0  ;;  %v1543_v13 = vpop.f32.mrf.mxu1 }
  0xff   : > { %v997_v15 = vadd.f32 %v996_v11, %v934_v9  ;;  %803 = vst [vmem:[%s1496_s11 + $0x40] sm:$0xff] %v572_v12  ;;  %v865_v16 = vadd.f32 %v1268_v61, %v864_v10  ;;  %835 = vst [vmem:[%s1496_s11 + $0x140] sm:$0xff] %v1543_v13  ;;  %v936_v20 = vmul.f32 %v572_v12, %v572_v12 }
 0x100   : > { %v1272_v17 = vpop.f32.mrf.mxu0  ;;  %v1548_v18 = vpop.f32.mrf.mxu1 }
 0x101   : > { %v866_v19 = vadd.f32 %v865_v16, %v572_v12  ;;  %v998_v21 = vadd.f32 %v997_v15, %v935_v14  ;;  %806 = vst [vmem:[%s1496_s11 + $0x58] sm:$0xff] %v1272_v17  ;;  %838 = vst [vmem:[%s1496_s11 + $0x158] sm:$0xff] %v1548_v18  ;;  %v939_v34 = vmul.f32 %v1272_v17, %v1272_v17 }
 0x102   : > { %v575_v22 = vpop.f32.mrf.mxu0  ;;  %v1553_v23 = vpop.f32.mrf.mxu1 }
 0x103   : > { %v999_v24 = vadd.f32 %v998_v21, %v936_v20  ;;  %804 = vst [vmem:[%s1496_s11 + $0x48] sm:$0xff] %v575_v22  ;;  %v867_v25 = vadd.f32 %v866_v19, %v575_v22  ;;  %v937_v26 = vmul.f32 %v575_v22, %v575_v22  ;;  %836 = vst [vmem:[%s1496_s11 + $0x148] sm:$0xff] %v1553_v23 }
 0x104   : > { %v1275_v27 = vpop.f32.mrf.mxu0  ;;  %v1558_v28 = vpop.f32.mrf.mxu1 }
 0x105   : > { %v868_v30 = vadd.f32 %v1271_v7, %v867_v25  ;;  %v1000_v31 = vadd.f32 %v999_v24, %v937_v26  ;;  %809 = vst [vmem:[%s1496_s11 + $0x70] sm:$0xff] %v1275_v27  ;;  %841 = vst [vmem:[%s1496_s11 + $0x170] sm:$0xff] %v1558_v28  ;;  %v942_v54 = vmul.f32 %v1275_v27, %v1275_v27 }
 0x106   : > { %v588_v32 = vpop.f32.mrf.mxu0  ;;  %v1563_v33 = vpop.f32.mrf.mxu1 }
 0x107   : > { %v1001_v35 = vadd.f32 %v1000_v31, %v938_v29  ;;  %807 = vst [vmem:[%s1496_s11 + $0x60] sm:$0xff] %v588_v32  ;;  %v869_v36 = vadd.f32 %v1272_v17, %v868_v30  ;;  %839 = vst [vmem:[%s1496_s11 + $0x160] sm:$0xff] %v1563_v33  ;;  %v940_v40 = vmul.f32 %v588_v32, %v588_v32 }
 0x108   : > { %v1276_v37 = vpop.f32.mrf.mxu0  ;;  %v1568_v38 = vpop.f32.mrf.mxu1 }
 0x109   : > { %v870_v39 = vadd.f32 %v869_v36, %v588_v32  ;;  %v1002_v42 = vadd.f32 %v1001_v35, %v939_v34  ;;  %810 = vst [vmem:[%s1496_s11 + $0x78] sm:$0xff] %v1276_v37  ;;  %842 = vst [vmem:[%s1496_s11 + $0x178] sm:$0xff] %v1568_v38  ;;  %v943_v60 = vmul.f32 %v1276_v37, %v1276_v37 }
 0x10a   : > { %v591_v44 = vpop.f32.mrf.mxu0  ;;  %v1573_v46 = vpop.f32.mrf.mxu1 }
 0x10b   : > { %v1003_v48 = vadd.f32 %v1002_v42, %v940_v40  ;;  %808 = vst [vmem:[%s1496_s11 + $0x68] sm:$0xff] %v591_v44  ;;  %v871_v49 = vadd.f32 %v870_v39, %v591_v44  ;;  %v941_v50 = vmul.f32 %v591_v44, %v591_v44  ;;  %840 = vst [vmem:[%s1496_s11 + $0x168] sm:$0xff] %v1573_v46 }
 0x10c   : > { %v1279_v51 = vpop.f32.mrf.mxu0  ;;  %v1578_v53 = vpop.f32.mrf.mxu1 }
 0x10d   : > { %v872_v55 = vadd.f32 %v1275_v27, %v871_v49  ;;  %v1004_v56 = vadd.f32 %v1003_v48, %v941_v50  ;;  %813 = vst [vmem:[%s1496_s11 + $0x90] sm:$0xff] %v1279_v51  ;;  %845 = vst [vmem:[%s1496_s11 + $0x190] sm:$0xff] %v1578_v53  ;;  %v946_v15 = vmul.f32 %v1279_v51, %v1279_v51 }
 0x10e   : > { %v604_v58 = vpop.f32.mrf.mxu0  ;;  %v1583_v59 = vpop.f32.mrf.mxu1 }
 0x10f   : > { %v1005_v61 = vadd.f32 %v1004_v56, %v942_v54  ;;  %811 = vst [vmem:[%s1496_s11 + $0x80] sm:$0xff] %v604_v58  ;;  %v873_v63 = vadd.f32 %v1276_v37, %v872_v55  ;;  %843 = vst [vmem:[%s1496_s11 + $0x180] sm:$0xff] %v1583_v59  ;;  %v944_v4 = vmul.f32 %v604_v58, %v604_v58 }
 0x110   : > { %v1280_v0 = vpop.f32.mrf.mxu0  ;;  %v1588_v1 = vpop.f32.mrf.mxu1 }
 0x111   : > { %v874_v2 = vadd.f32 %v873_v63, %v604_v58  ;;  %v1006_v5 = vadd.f32 %v1005_v61, %v943_v60  ;;  %814 = vst [vmem:[%s1496_s11 + $0x98] sm:$0xff] %v1280_v0  ;;  %846 = vst [vmem:[%s1496_s11 + $0x198] sm:$0xff] %v1588_v1  ;;  %v947_v21 = vmul.f32 %v1280_v0, %v1280_v0 }
 0x112   : > { %v607_v6 = vpop.f32.mrf.mxu0  ;;  %v1593_v7 = vpop.f32.mrf.mxu1 }
 0x113   : > { %v1007_v9 = vadd.f32 %v1006_v5, %v944_v4  ;;  %812 = vst [vmem:[%s1496_s11 + $0x88] sm:$0xff] %v607_v6  ;;  %v875_v10 = vadd.f32 %v874_v2, %v607_v6  ;;  %v945_v11 = vmul.f32 %v607_v6, %v607_v6  ;;  %844 = vst [vmem:[%s1496_s11 + $0x188] sm:$0xff] %v1593_v7 }
 0x114   : > { %v1283_v12 = vpop.f32.mrf.mxu0  ;;  %v1598_v14 = vpop.f32.mrf.mxu1 }
 0x115   : > { %v876_v16 = vadd.f32 %v1279_v51, %v875_v10  ;;  %v1008_v17 = vadd.f32 %v1007_v9, %v945_v11  ;;  %817 = vst [vmem:[%s1496_s11 + $0xb0] sm:$0xff] %v1283_v12  ;;  %849 = vst [vmem:[%s1496_s11 + $0x1b0] sm:$0xff] %v1598_v14  ;;  %v950_v40 = vmul.f32 %v1283_v12, %v1283_v12 }
 0x116   : > { %v620_v19 = vpop.f32.mrf.mxu0  ;;  %v1603_v20 = vpop.f32.mrf.mxu1 }
 0x117   : > { %v1009_v22 = vadd.f32 %v1008_v17, %v946_v15  ;;  %815 = vst [vmem:[%s1496_s11 + $0xa0] sm:$0xff] %v620_v19  ;;  %v877_v24 = vadd.f32 %v1280_v0, %v876_v16  ;;  %847 = vst [vmem:[%s1496_s11 + $0x1a0] sm:$0xff] %v1603_v20  ;;  %v948_v29 = vmul.f32 %v620_v19, %v620_v19 }
 0x118   : > { %v1284_v25 = vpop.f32.mrf.mxu0  ;;  %v1608_v26 = vpop.f32.mrf.mxu1 }
 0x119   : > { %v878_v27 = vadd.f32 %v877_v24, %v620_v19  ;;  %v1010_v30 = vadd.f32 %v1009_v22, %v947_v21  ;;  %818 = vst [vmem:[%s1496_s11 + $0xb8] sm:$0xff] %v1284_v25  ;;  %850 = vst [vmem:[%s1496_s11 + $0x1b8] sm:$0xff] %v1608_v26  ;;  %v951_v50 = vmul.f32 %v1284_v25, %v1284_v25 }
 0x11a   : > { %v623_v31 = vpop.f32.mrf.mxu0  ;;  %v1613_v32 = vpop.f32.mrf.mxu1 }
 0x11b   : > { %v1011_v34 = vadd.f32 %v1010_v30, %v948_v29  ;;  %816 = vst [vmem:[%s1496_s11 + $0xa8] sm:$0xff] %v623_v31  ;;  %v879_v35 = vadd.f32 %v878_v27, %v623_v31  ;;  %v949_v36 = vmul.f32 %v623_v31, %v623_v31  ;;  %848 = vst [vmem:[%s1496_s11 + $0x1a8] sm:$0xff] %v1613_v32 }
 0x11c   : > { %v1287_v37 = vpop.f32.mrf.mxu0  ;;  %v1618_v39 = vpop.f32.mrf.mxu1 }
 0x11d   : > { %v880_v42 = vadd.f32 %v1283_v12, %v879_v35  ;;  %v1012_v44 = vadd.f32 %v1011_v34, %v949_v36  ;;  %821 = vst [vmem:[%s1496_s11 + $0xd0] sm:$0xff] %v1287_v37  ;;  %853 = vst [vmem:[%s1496_s11 + $0x1d0] sm:$0xff] %v1618_v39  ;;  %v954_v10 = vmul.f32 %v1287_v37, %v1287_v37 }
 0x11e   : > { %v636_v48 = vpop.f32.mrf.mxu0  ;;  %v1623_v49 = vpop.f32.mrf.mxu1 }
 0x11f   : > { %v1013_v51 = vadd.f32 %v1012_v44, %v950_v40  ;;  %819 = vst [vmem:[%s1496_s11 + $0xc0] sm:$0xff] %v636_v48  ;;  %v881_v54 = vadd.f32 %v1284_v25, %v880_v42  ;;  %851 = vst [vmem:[%s1496_s11 + $0x1c0] sm:$0xff] %v1623_v49  ;;  %v952_v60 = vmul.f32 %v636_v48, %v636_v48 }
 0x120   : > { %v1288_v55 = vpop.f32.mrf.mxu0  ;;  %v1628_v56 = vpop.f32.mrf.mxu1 }
 0x121   : > { %v882_v58 = vadd.f32 %v881_v54, %v636_v48  ;;  %v1014_v61 = vadd.f32 %v1013_v51, %v951_v50  ;;  %822 = vst [vmem:[%s1496_s11 + $0xd8] sm:$0xff] %v1288_v55  ;;  %854 = vst [vmem:[%s1496_s11 + $0x1d8] sm:$0xff] %v1628_v56  ;;  %v955_v17 = vmul.f32 %v1288_v55, %v1288_v55 }
 0x122   : > { %v639_v63 = vpop.f32.mrf.mxu0  ;;  %v1633_v0 = vpop.f32.mrf.mxu1  ;;  %v960_v51 = vmul.f32 %v1503_v43, %v1503_v43 }
 0x123   : > { %v1015_v2 = vadd.f32 %v1014_v61, %v952_v60  ;;  %820 = vst [vmem:[%s1496_s11 + $0xc8] sm:$0xff] %v639_v63  ;;  %v883_v4 = vadd.f32 %v882_v58, %v639_v63  ;;  %v953_v5 = vmul.f32 %v639_v63, %v639_v63  ;;  %852 = vst [vmem:[%s1496_s11 + $0x1c8] sm:$0xff] %v1633_v0 }
 0x124   : > { %v1291_v6 = vpop.f32.mrf.mxu0  ;;  %v1638_v9 = vpop.f32.mrf.mxu1  ;;  %v961_v60 = vmul.f32 %v1513_v47, %v1513_v47  ;;  %v962_v63 = vmul.f32 %v1498_v41, %v1498_v41 }
 0x125   : > { %v884_v11 = vadd.f32 %v1287_v37, %v883_v4  ;;  %v1016_v12 = vadd.f32 %v1015_v2, %v953_v5  ;;  %825 = vst [vmem:[%s1496_s11 + $0xf0] sm:$0xff] %v1291_v6  ;;  %857 = vst [vmem:[%s1496_s11 + $0x1f0] sm:$0xff] %v1638_v9  ;;  %v958_v37 = vmul.f32 %v1291_v6, %v1291_v6 }
 0x126   : > { %v652_v15 = vpop.f32.mrf.mxu0  ;;  %v1643_v16 = vpop.f32.mrf.mxu1  ;;  %v963_v5 = vmul.f32 %v1508_v45, %v1508_v45 }
 0x127   : > { %v1017_v19 = vadd.f32 %v1016_v12, %v954_v10  ;;  %823 = vst [vmem:[%s1496_s11 + $0xe0] sm:$0xff] %v652_v15  ;;  %v885_v21 = vadd.f32 %v1288_v55, %v884_v11  ;;  %855 = vst [vmem:[%s1496_s11 + $0x1e0] sm:$0xff] %v1643_v16  ;;  %v956_v27 = vmul.f32 %v652_v15, %v652_v15 }
 0x128   : > { %v1292_v22 = vpop.f32.mrf.mxu0  ;;  %v1648_v24 = vpop.f32.mrf.mxu1  ;;  %v964_v11 = vmul.f32 %v1523_v57, %v1523_v57 }
 0x129   : > { %v886_v25 = vadd.f32 %v885_v21, %v652_v15  ;;  %v1018_v29 = vadd.f32 %v1017_v19, %v955_v17  ;;  %826 = vst [vmem:[%s1496_s11 + $0xf8] sm:$0xff] %v1292_v22  ;;  %858 = vst [vmem:[%s1496_s11 + $0x1f8] sm:$0xff] %v1648_v24  ;;  %v959_v44 = vmul.f32 %v1292_v22, %v1292_v22 }
 0x12a   : > { %v655_v30 = vpop.f32.mrf.mxu0  ;;  %v1653_v31 = vpop.f32.mrf.mxu1  ;;  %v965_v17 = vmul.f32 %v1533_v3, %v1533_v3 }
 0x12b   : > { %v1019_v34 = vadd.f32 %v1018_v29, %v956_v27  ;;  %824 = vst [vmem:[%s1496_s11 + $0xe8] sm:$0xff] %v655_v30  ;;  %v887_v35 = vadd.f32 %v886_v25, %v655_v30  ;;  %v957_v36 = vmul.f32 %v655_v30, %v655_v30  ;;  %856 = vst [vmem:[%s1496_s11 + $0x1e8] sm:$0xff] %v1653_v31 }
 0x12c   : > { %v968_v27 = vmul.f32 %v1543_v13, %v1543_v13 }
 0x12d   : > { %v888_v40 = vadd.f32 %v1291_v6, %v887_v35  ;;  %v1020_v42 = vadd.f32 %v1019_v34, %v957_v36  ;;  %v969_v34 = vmul.f32 %v1553_v23, %v1553_v23 }
 0x12f   : > { %v889_v48 = vadd.f32 %v1292_v22, %v888_v40  ;;  %v1021_v50 = vadd.f32 %v1020_v42, %v958_v37  ;;  %v972_v42 = vmul.f32 %v1563_v33, %v1563_v33 }
 0x131   : > { %v1022_v54 = vadd.f32 %v1021_v50, %v959_v44  ;;  %v890_v55 = vadd.f32 %v889_v48, %v1503_v43  ;;  %v973_v50 = vmul.f32 %v1573_v46, %v1573_v46 }
 0x133   : > { %v891_v58 = vadd.f32 %v890_v55, %v1513_v47  ;;  %v1023_v61 = vadd.f32 %v1022_v54, %v960_v51 }
 0x135   : > { %v892_v2 = vadd.f32 %v1498_v41, %v891_v58  ;;  %v1024_v4 = vadd.f32 %v1023_v61, %v961_v60  ;;  %v966_v41 = vmul.f32 %v1518_v52, %v1518_v52  ;;  %v976_v60 = vmul.f32 %v1583_v59, %v1583_v59 }
 0x137   : > { %v1025_v6 = vadd.f32 %v1024_v4, %v962_v63  ;;  %v893_v10 = vadd.f32 %v1508_v45, %v892_v2  ;;  %v967_v45 = vmul.f32 %v1528_v62, %v1528_v62  ;;  %v977_v2 = vmul.f32 %v1593_v7, %v1593_v7 }
 0x139   : > { %v894_v43 = vadd.f32 %v893_v10, %v1523_v57  ;;  %v1026_v12 = vadd.f32 %v1025_v6, %v963_v5 }
 0x13b   : > { %v1027_v47 = vadd.f32 %v1026_v12, %v964_v11  ;;  %v895_v15 = vadd.f32 %v894_v43, %v1533_v3  ;;  %v980_v43 = vmul.f32 %v1603_v20, %v1603_v20 }
 0x13d   : > { %v896_v19 = vadd.f32 %v1518_v52, %v895_v15  ;;  %v1028_v21 = vadd.f32 %v1027_v47, %v965_v17  ;;  %v970_v52 = vmul.f32 %v1538_v8, %v1538_v8  ;;  %v981_v47 = vmul.f32 %v1613_v32, %v1613_v32 }
 0x13f   : > { %v1029_v22 = vadd.f32 %v1028_v21, %v966_v41  ;;  %v897_v25 = vadd.f32 %v1528_v62, %v896_v19  ;;  %v971_v62 = vmul.f32 %v1548_v18, %v1548_v18  ;;  %v984_v21 = vmul.f32 %v1623_v49, %v1623_v49 }
 0x141   : > { %v898_v57 = vadd.f32 %v897_v25, %v1543_v13  ;;  %v1030_v29 = vadd.f32 %v1029_v22, %v967_v45  ;;  %v985_v25 = vmul.f32 %v1633_v0, %v1633_v0 }
 0x143   : > { %v1031_v30 = vadd.f32 %v1030_v29, %v968_v27  ;;  %v899_v3 = vadd.f32 %v898_v57, %v1553_v23 }
 0x145   : > { %v900_v35 = vadd.f32 %v1538_v8, %v899_v3  ;;  %v1032_v36 = vadd.f32 %v1031_v30, %v969_v34  ;;  %v974_v8 = vmul.f32 %v1558_v28, %v1558_v28  ;;  %v988_v3 = vmul.f32 %v1643_v16, %v1643_v16 }
 0x147   : > { %v1033_v37 = vadd.f32 %v1032_v36, %v970_v52  ;;  %v901_v40 = vadd.f32 %v1548_v18, %v900_v35  ;;  %v975_v18 = vmul.f32 %v1568_v38, %v1568_v38  ;;  %v990_v35 = vmul.f32 %v1638_v9, %v1638_v9 }
 0x149   : > { %v902_v13 = vadd.f32 %v901_v40, %v1563_v33  ;;  %v1034_v44 = vadd.f32 %v1033_v37, %v971_v62 }
 0x14b   : > { %v1035_v48 = vadd.f32 %v1034_v44, %v972_v42  ;;  %v903_v23 = vadd.f32 %v902_v13, %v1573_v46 }
 0x14d   : > { %v904_v51 = vadd.f32 %v1558_v28, %v903_v23  ;;  %v1036_v54 = vadd.f32 %v1035_v48, %v973_v50  ;;  %v978_v28 = vmul.f32 %v1578_v53, %v1578_v53 }
 0x14f   : > { %v1037_v55 = vadd.f32 %v1036_v54, %v974_v8  ;;  %v905_v58 = vadd.f32 %v1568_v38, %v904_v51  ;;  %v979_v38 = vmul.f32 %v1588_v1, %v1588_v1 }
 0x151   : > { %v906_v33 = vadd.f32 %v905_v58, %v1583_v59  ;;  %v1038_v61 = vadd.f32 %v1037_v55, %v975_v18 }
 0x153   : > { %v1039_v63 = vadd.f32 %v1038_v61, %v976_v60  ;;  %v907_v46 = vadd.f32 %v906_v33, %v1593_v7 }
 0x155   : > { %v908_v4 = vadd.f32 %v1578_v53, %v907_v46  ;;  %v1040_v5 = vadd.f32 %v1039_v63, %v977_v2  ;;  %v982_v53 = vmul.f32 %v1598_v14, %v1598_v14 }
 0x157   : > { %v1041_v6 = vadd.f32 %v1040_v5, %v978_v28  ;;  %v909_v10 = vadd.f32 %v1588_v1, %v908_v4  ;;  %v983_v1 = vmul.f32 %v1608_v26, %v1608_v26 }
 0x159   : > { %v910_v59 = vadd.f32 %v909_v10, %v1603_v20  ;;  %v1042_v11 = vadd.f32 %v1041_v6, %v979_v38 }
 0x15b   : > { %v1043_v12 = vadd.f32 %v1042_v11, %v980_v43  ;;  %v911_v7 = vadd.f32 %v910_v59, %v1613_v32 }
 0x15d   : > { %v912_v15 = vadd.f32 %v1598_v14, %v911_v7  ;;  %v1044_v17 = vadd.f32 %v1043_v12, %v981_v47  ;;  %v986_v14 = vmul.f32 %v1618_v39, %v1618_v39 }
 0x15f   : > { %v1045_v41 = vadd.f32 %v1044_v17, %v982_v53  ;;  %v913_v19 = vadd.f32 %v1608_v26, %v912_v15  ;;  %v987_v26 = vmul.f32 %v1628_v56, %v1628_v56 }
 0x161   : > { %v914_v20 = vadd.f32 %v913_v19, %v1623_v49  ;;  %v1046_v45 = vadd.f32 %v1045_v41, %v983_v1 }
 0x163   : > { %v1047_v22 = vadd.f32 %v1046_v45, %v984_v21  ;;  %v915_v32 = vadd.f32 %v914_v20, %v1633_v0 }
 0x165   : > { %v916_v57 = vadd.f32 %v1618_v39, %v915_v32  ;;  %v1048_v27 = vadd.f32 %v1047_v22, %v985_v25  ;;  %v989_v39 = vmul.f32 %v1653_v31, %v1653_v31 }
 0x167   : > { %v1049_v29 = vadd.f32 %v1048_v27, %v986_v14  ;;  %v917_v49 = vadd.f32 %v1628_v56, %v916_v57  ;;  %v991_v56 = vmul.f32 %v1648_v24, %v1648_v24 }
 0x169   : > { %v918_v30 = vadd.f32 %v917_v49, %v1643_v16  ;;  %v1050_v34 = vadd.f32 %v1049_v29, %v987_v26 }
 0x16b   : > { %v1051_v0 = vadd.f32 %v1050_v34, %v988_v3  ;;  %v919_v52 = vadd.f32 %v918_v30, %v1653_v31 }
 0x16d   : > { %v920_v36 = vadd.f32 %v1638_v9, %v919_v52  ;;  %v1052_v62 = vadd.f32 %v1051_v0, %v989_v39 }
 0x16f   : > { %v921_v37 = vadd.f32 %v1648_v24, %v920_v36  ;;  %v1053_v16 = vadd.f32 %v1052_v62, %v990_v35 }
 0x171   : > { %v922_v40 = vrot.slane %v921_v37, 4  ;;  %v1054_v13 = vadd.f32 %v1053_v16, %v991_v56 }
 0x173   : > { %v923_v42 = vadd.f32 %v922_v40, %v921_v37  ;;  %v1055_v44 = vrot.slane %v1054_v13, 4 }
 0x175   : > { %v924_v48 = vrot.slane %v923_v42, 2  ;;  %v1056_v23 = vadd.f32 %v1055_v44, %v1054_v13 }
 0x177   : > { %v925_v31 = vadd.f32 %v924_v48, %v923_v42  ;;  %v1057_v50 = vrot.slane %v1056_v23, 2 }
 0x179   : > { %v926_v8 = vrot.slane %v925_v31, 1  ;;  %v1058_v51 = vadd.f32 %v1057_v50, %v1056_v23 }
 0x17b   : > { %v1059_v9 = vrot.slane %v1058_v51, 1  ;;  %v927_v54 = vadd.f32 %v926_v8, %v925_v31 }
 0x17d   : > { %v1060_v18 = vadd.f32 %v1059_v9, %v1058_v51 }
 0x17f   : > { %v1062_v24 = vsel %vm1061_vm0, %v927_v54, %v1060_v18 }
 0x180   : > { %v1064_v55 = vsel %vm1063_vm1, %v1062_v24, 0.0 }
 0x181   : > { %1065 = vst [vmem:[%s184_s17] sm:$0xff] %v1064_v55 }
 0x182 PF: > { %s14_s12 = sadd.s32 1, %s1395_s12  }
 0x183   : > { %p11_p5 = scmp.ge.s32.totalorder %s14_s12, 10  }
 0x185   :  { %13 = sbr.rel (!%p11_p5) target bundleno = 1 (0x1), region = 70 }

</bundles_post_ra>
